<compile_context>
chip_gen: v5e
topology: v5e:2x2
jax: 0.10.0
libtpu: 0.0.40
codegen_flags: <defaults>
</compile_context>

<pallas_src>
import functools

import jax
import jax.numpy as jnp
from jax.experimental import pallas as pl
from jax.experimental.pallas import tpu as pltpu


_ROW = 32                                   # sublane tile (int8/bool friendly)
_LANE = 128                                 # lane tile
_DEFAULT_VMEM_BUDGET = 12 * 1024 * 1024     # dbl-buffered inputs + f32 temps
_F32_TEMP_BYTES = 16                        # ~4 live f32 temporaries / element


def _round_up(x, m):
    return ((x + m - 1) // m) * m


def _cdiv(a, b):
    return -(-a // b)


def _masked_bce_kernel(probs_ref, corrs_ref, scores_ref, out_ref, *,
                       shift_cols, tile_rows, tile_cols, n_rows, n_cols):
    """One (tile_rows, W) block of the masked-BCE partial reduction.

    shift_cols=True : probs/corrs blocks carry raw columns [0, S); column t+1
                      is aligned with scores column t via a lane-offset load
                      (the reference's `[:, 1:]`) - no wrapper slice copy.
    shift_cols=False: probs/corrs were pre-sliced to width T; ragged column
                      edges are masked with an iota against the static T.

    out_ref (8, W): row 0 = per-lane sum of clamp(log q, -100) over valid
    elements, row 1 = per-lane count of valid elements, rows 2..7 = 0.
    """
    i = pl.program_id(0)
    j = pl.program_id(1)

    s = scores_ref[...].astype(jnp.float32)              # (tile_rows, W)
    if shift_cols:
        p_ids = probs_ref[:, pl.ds(1, n_cols)]           # columns 1..S-1
        y = corrs_ref[:, pl.ds(1, n_cols)]
    else:
        p_ids = probs_ref[...]
        y = corrs_ref[...]

    rows = jax.lax.broadcasted_iota(jnp.int32, s.shape, 0)
    valid = (p_ids > 0) & (rows < n_rows - i * tile_rows)
    if not shift_cols:
        cols = jax.lax.broadcasted_iota(jnp.int32, s.shape, 1)
        valid = valid & (cols < n_cols - j * tile_cols)

    y_pos = y if y.dtype == jnp.bool_ else (y != 0)
    # Binary labels -> single EUP log per element.  Guard q *before* the log
    # so unspecified data in ragged boundary blocks never reaches it
    # (invalid -> q = 1 -> log q = 0 -> contributes nothing to the sums).
    q = jnp.where(valid, jnp.where(y_pos, s, 1.0 - s), 1.0)
    logq = jnp.maximum(jnp.log(q), jnp.float32(-100.0))  # torch's -100 clamp

    lane_log = jnp.sum(logq, axis=0, keepdims=True)                       # (1, W)
    lane_cnt = jnp.sum(valid.astype(jnp.float32), axis=0, keepdims=True)  # (1, W)

    r = jax.lax.broadcasted_iota(jnp.int32, out_ref.shape, 0)
    out_ref[...] = jnp.where(r == 0, lane_log,
                             jnp.where(r == 1, lane_cnt, jnp.float32(0.0)))


def _masked_bce_loss(probs_full, corrs_full, scores, vmem_budget_bytes,
                     allow_in_kernel_shift=True):
    """Mean masked BCE.

    probs_full : (B, S)   int32   problem ids (0 == padding)
    corrs_full : (B, S)   bool/int correctness labels
    scores     : (B, S-1) float   predictions in (0, 1)

    Returns scalar f32 mean BCE over positions where probs_full[:, 1:] > 0
    (empty mask -> nan, matching torch's mean over an empty selection).
    """
    B, T = scores.shape
    S = T + 1
    if probs_full.shape != (B, S) or corrs_full.shape != (B, S):
        raise ValueError("probs/corrs must be (B, S) with scores (B, S-1)")

    in_bytes = (jnp.dtype(probs_full.dtype).itemsize
                + jnp.dtype(corrs_full.dtype).itemsize
                + jnp.dtype(scores.dtype).itemsize)
    per_elem = 2 * in_bytes + _F32_TEMP_BYTES          # dbl-buffered + temps
    max_elems = max(int(vmem_budget_bytes) // per_elem, _ROW * _LANE)

    full_rows = _ROW * S <= max_elems                  # whole row fits a block
    shift_cols = full_rows and allow_in_kernel_shift

    if shift_cols:
        probs_in, corrs_in = probs_full, corrs_full    # raw -> no slice copy
        pc_w = S
    elif full_rows:
        probs_in, corrs_in = probs_full[:, 1:], corrs_full[:, 1:]
        pc_w = T
    else:
        # Long sequences: tile T too (wrapper-side slice accepted so column
        # blocks stay shift-free, no cross-block seam).
        probs_in, corrs_in = probs_full[:, 1:], corrs_full[:, 1:]
        pc_w = None                                    # set below (= sc_w)

    if full_rows:
        nb_c = 1
        sc_w = T
        tb = min(max(_ROW, (max_elems // S) // _ROW * _ROW),
                 _round_up(B, _ROW))
    else:
        sc_w = min(_round_up(T, _LANE),
                   max(_LANE, (max_elems // _ROW) // _LANE * _LANE))
        pc_w = sc_w
        tb = min(_round_up(B, _ROW),
                 max(_ROW, (max_elems // sc_w) // _ROW * _ROW))
        nb_c = _cdiv(T, sc_w)
    if B >= 2 * _ROW:                    # keep >= 2 row blocks for v7x's 2 TCs
        tb = min(tb, _round_up(_cdiv(B, 2), _ROW))
    nb_r = _cdiv(B, tb)
    grid = (nb_r, nb_c)

    if full_rows:
        pc_spec = pl.BlockSpec((tb, pc_w), lambda i, j: (i, 0))
        sc_spec = pl.BlockSpec((tb, sc_w), lambda i, j: (i, 0))
    else:
        pc_spec = pl.BlockSpec((tb, pc_w), lambda i, j: (i, j))
        sc_spec = pl.BlockSpec((tb, sc_w), lambda i, j: (i, j))
    out_spec = pl.BlockSpec((8, sc_w), lambda i, j: (i, j))
    out_shape = jax.ShapeDtypeStruct((nb_r * 8, nb_c * sc_w), jnp.float32)

    kernel = functools.partial(
        _masked_bce_kernel,
        shift_cols=shift_cols, tile_rows=tb, tile_cols=sc_w,
        n_rows=B, n_cols=T)

    block_bytes = tb * max(pc_w, sc_w) * per_elem
    vmem_limit = int(min(56 * 1024 * 1024,
                         max(32 * 1024 * 1024, 2 * block_bytes)))

    cost = pl.CostEstimate(
        flops=int(12 * B * T),
        transcendentals=int(B * T),
        bytes_accessed=int(
            B * S * (jnp.dtype(probs_full.dtype).itemsize
                     + jnp.dtype(corrs_full.dtype).itemsize)
            + B * T * jnp.dtype(scores.dtype).itemsize
            + nb_r * 8 * nb_c * sc_w * 4))

    partials = pl.pallas_call(
        kernel,
        out_shape=out_shape,
        grid=grid,
        in_specs=[pc_spec, pc_spec, sc_spec],
        out_specs=out_spec,
        compiler_params=pltpu.CompilerParams(
            dimension_semantics=("parallel", "parallel"),
            vmem_limit_bytes=vmem_limit),
        cost_estimate=cost,
    )(probs_in, corrs_in, scores)

    # Row 0 of every (8, W) tile: per-lane sums of clamp(log q, -100);
    # row 1: per-lane valid counts.  Negate once here (single-log BCE).
    log_sum = jnp.sum(partials[0::8, :])
    count = jnp.sum(partials[1::8, :])
    return -log_sum / count


def base_model_loss(probs, corrs, scores,
                    vmem_budget_bytes=_DEFAULT_VMEM_BUDGET):
    """JAX equivalent of BaseModel.get_feed_dict + BaseModel.loss."""
    probs = probs if probs.dtype == jnp.int32 else probs.astype(jnp.int32)
    try:
        # Fast path: raw bool corrs + in-kernel [:, 1:] realignment -> no XLA
        # pad / slice / astype copies in front of the HBM-bound kernel.
        return _masked_bce_loss(probs, corrs, scores, vmem_budget_bytes,
                                allow_in_kernel_shift=True)
    except Exception:   # pragma: no cover - depends on the Mosaic feature set
        # Conservative fallback (one int8 copy of corrs + wrapper-side slice,
        # full-block loads only) for builds without bool-ref / lane-offset
        # load support; numerics are identical.
        corrs8 = corrs if corrs.dtype == jnp.int8 else corrs.astype(jnp.int8)
        return _masked_bce_loss(probs, corrs8, scores, vmem_budget_bytes,
                                allow_in_kernel_shift=False)


def _reference_loss(probs, corrs, scores):
    """Pure-jnp reference of BaseModel's masked mean BCE (torch -100 clamp)."""
    filt = probs[:, 1:] > 0
    labels = corrs[:, 1:].astype(jnp.float32)
    p = scores.astype(jnp.float32)
    log_p = jnp.maximum(jnp.log(p), -100.0)
    log_1mp = jnp.maximum(jnp.log(1.0 - p), -100.0)
    bce = -(labels * log_p + (1.0 - labels) * log_1mp)
    m = filt.astype(jnp.float32)
    return jnp.sum(bce * m) / jnp.sum(m)


if __name__ == "__main__":
    key = jax.random.PRNGKey(0)
    k_probs, k_corrs, k_scores, k2 = jax.random.split(key, 4)

    # ---- Small shapes consistent with the module: batch=4, seq len S=17 ----
    B, S = 4, 17
    probs = jax.random.randint(k_probs, (B, S), minval=0, maxval=50,
                               dtype=jnp.int32)
    probs = probs.at[:, :4].set(jnp.maximum(probs[:, :4], 1))  # non-empty mask
    corrs = jax.random.bernoulli(k_corrs, p=0.6, shape=(B, S))  # bool labels
    scores = jax.nn.sigmoid(
        jax.random.normal(k_scores, (B, S - 1), dtype=jnp.float32))

    loss = jax.block_until_ready(base_model_loss(probs, corrs, scores))
    ref = jax.block_until_ready(_reference_loss(probs, corrs, scores))
    assert jnp.allclose(loss, ref, rtol=1e-4, atol=1e-4), (loss, ref)

    # ---- Second check: force the 2-D (row x column) tiled path with ragged
    #      edges on both axes via a tiny VMEM budget. -----------------------
    kp2, kc2, ks2 = jax.random.split(k2, 3)
    B2, S2 = 40, 161
    probs2 = jax.random.randint(kp2, (B2, S2), minval=0, maxval=30,
                                dtype=jnp.int32)
    corrs2 = jax.random.bernoulli(kc2, p=0.5, shape=(B2, S2))
    scores2 = jax.nn.sigmoid(
        jax.random.normal(ks2, (B2, S2 - 1), dtype=jnp.float32))

    loss2 = jax.block_until_ready(
        base_model_loss(probs2, corrs2, scores2,
                        vmem_budget_bytes=128 * 1024))
    ref2 = jax.block_until_ready(_reference_loss(probs2, corrs2, scores2))
    assert jnp.allclose(loss2, ref2, rtol=1e-4, atol=1e-4), (loss2, ref2)

    print("KERNEL_OK")
</pallas_src>

<mosaic_0001>
module attributes {stable_mosaic.version = 11 : i64} {
  func.func @_masked_bce_kernel(%arg0: i32, %arg1: i32, %arg2: memref<32x17xi32, #tpu.memory_space<vmem>>, %arg3: memref<32x17xi32, #tpu.memory_space<vmem>>, %arg4: memref<32x16xf32, #tpu.memory_space<vmem>>, %arg5: memref<8x16xf32, #tpu.memory_space<vmem>>) attributes {dimension_semantics = [#tpu.dimension_semantics<parallel>, #tpu.dimension_semantics<parallel>], iteration_bounds = array<i64: 1, 1>, scalar_prefetch = 0 : i64, scratch_operands = 0 : i64, tpu.core_type = #tpu.core_type<tc>, window_params = [{transform_indices = @transform_0, window_bounds = array<i64: 32, 17>}, {transform_indices = @transform_1, window_bounds = array<i64: 32, 17>}, {transform_indices = @transform_2, window_bounds = array<i64: 32, 16>}, {transform_indices = @transform_3, window_bounds = array<i64: 8, 16>}]} {
    %c0 = arith.constant 0 : index
    %c0_0 = arith.constant 0 : index
    %0 = vector.load %arg4[%c0, %c0_0] : memref<32x16xf32, #tpu.memory_space<vmem>>, vector<32x16xf32>
    %c0_1 = arith.constant 0 : index
    %c1 = arith.constant 1 : index
    %1 = vector.load %arg2[%c0_1, %c1] : memref<32x17xi32, #tpu.memory_space<vmem>>, vector<32x16xi32>
    %c0_2 = arith.constant 0 : index
    %c1_3 = arith.constant 1 : index
    %2 = vector.load %arg3[%c0_2, %c1_3] : memref<32x17xi32, #tpu.memory_space<vmem>>, vector<32x16xi32>
    %cst = arith.constant dense<0> : vector<32x16xi32>
    %3 = arith.cmpi ne, %2, %cst : vector<32x16xi32>
    %4 = tpu.iota {dimensions = array<i32: 0>} : vector<32x16xi32>
    %c0_i32 = arith.constant 0 : i32
    %5 = vector.broadcast %c0_i32 : i32 to vector<32x16xi32>
    %6 = arith.cmpi sgt, %1, %5 : vector<32x16xi32>
    %c32_i32 = arith.constant 32 : i32
    %7 = arith.muli %arg0, %c32_i32 : i32
    %c4_i32 = arith.constant 4 : i32
    %8 = arith.subi %c4_i32, %7 : i32
    %9 = vector.broadcast %8 : i32 to vector<32x16xi32>
    %10 = arith.cmpi slt, %4, %9 : vector<32x16xi32>
    %11 = arith.andi %6, %10 : vector<32x16xi1>
    %cst_4 = arith.constant 1.000000e+00 : f32
    %12 = vector.broadcast %cst_4 : f32 to vector<32x16xf32>
    %13 = arith.subf %12, %0 : vector<32x16xf32>
    %14 = arith.select %3, %0, %13 : vector<32x16xi1>, vector<32x16xf32>
    %cst_5 = arith.constant 1.000000e+00 : f32
    %15 = vector.broadcast %cst_5 : f32 to vector<32x16xf32>
    %16 = arith.select %11, %14, %15 : vector<32x16xi1>, vector<32x16xf32>
    %17 = math.log %16 : vector<32x16xf32>
    %cst_6 = arith.constant -1.000000e+02 : f32
    %18 = vector.broadcast %cst_6 : f32 to vector<32x16xf32>
    %19 = arith.maximumf %17, %18 : vector<32x16xf32>
    %cst_7 = arith.constant dense<0.000000e+00> : vector<16xf32>
    %20 = vector.multi_reduction <add>, %19, %cst_7 [0] : vector<32x16xf32> to vector<16xf32>
    %21 = vector.shape_cast %20 : vector<16xf32> to vector<1x16xf32>
    %22 = arith.extui %11 : vector<32x16xi1> to vector<32x16xi32>
    %23 = arith.sitofp %22 : vector<32x16xi32> to vector<32x16xf32>
    %cst_8 = arith.constant dense<0.000000e+00> : vector<16xf32>
    %24 = vector.multi_reduction <add>, %23, %cst_8 [0] : vector<32x16xf32> to vector<16xf32>
    %25 = vector.shape_cast %24 : vector<16xf32> to vector<1x16xf32>
    %26 = tpu.iota {dimensions = array<i32: 0>} : vector<8x16xi32>
    %c0_i32_9 = arith.constant 0 : i32
    %27 = vector.broadcast %c0_i32_9 : i32 to vector<8x16xi32>
    %28 = arith.cmpi eq, %26, %27 : vector<8x16xi32>
    %c1_i32 = arith.constant 1 : i32
    %29 = vector.broadcast %c1_i32 : i32 to vector<8x16xi32>
    %30 = arith.cmpi eq, %26, %29 : vector<8x16xi32>
    %cst_10 = arith.constant 0.000000e+00 : f32
    %31 = vector.shape_cast %25 : vector<1x16xf32> to vector<1x16xf32>
    %32 = vector.broadcast %31 : vector<1x16xf32> to vector<8x16xf32>
    %33 = vector.broadcast %cst_10 : f32 to vector<8x16xf32>
    %34 = arith.select %30, %32, %33 : vector<8x16xi1>, vector<8x16xf32>
    %35 = vector.shape_cast %21 : vector<1x16xf32> to vector<1x16xf32>
    %36 = vector.broadcast %35 : vector<1x16xf32> to vector<8x16xf32>
    %37 = arith.select %28, %36, %34 : vector<8x16xi1>, vector<8x16xf32>
    %c0_11 = arith.constant 0 : index
    %c0_12 = arith.constant 0 : index
    %38 = vector.load %arg5[%c0_11, %c0_12] : memref<8x16xf32, #tpu.memory_space<vmem>>, vector<8x16xf32>
    tpu.vector_store %arg5[%c0_11, %c0_12], %37 {strides = array<i32>} : memref<8x16xf32, #tpu.memory_space<vmem>>, vector<8x16xf32>,
    return
  }
  func.func @transform_0(%arg0: i32, %arg1: i32) -> (i32, i32) {
    %c0_i32 = arith.constant 0 : i32
    %c0_i32_0 = arith.constant 0 : i32
    return %arg0, %c0_i32 : i32, i32
  }
  func.func @transform_1(%arg0: i32, %arg1: i32) -> (i32, i32) {
    %c0_i32 = arith.constant 0 : i32
    %c0_i32_0 = arith.constant 0 : i32
    return %arg0, %c0_i32 : i32, i32
  }
  func.func @transform_2(%arg0: i32, %arg1: i32) -> (i32, i32) {
    %c0_i32 = arith.constant 0 : i32
    %c0_i32_0 = arith.constant 0 : i32
    return %arg0, %c0_i32 : i32, i32
  }
  func.func @transform_3(%arg0: i32, %arg1: i32) -> (i32, i32) {
    %c0_i32 = arith.constant 0 : i32
    return %arg0, %arg1 : i32, i32
  }
}

module attributes {stable_mosaic.version = 11 : i64} {
  func.func @_masked_bce_kernel(%arg0: i32, %arg1: i32, %arg2: memref<32x16xi32, #tpu.memory_space<vmem>>, %arg3: memref<32x16xi8, #tpu.memory_space<vmem>>, %arg4: memref<32x16xf32, #tpu.memory_space<vmem>>, %arg5: memref<8x16xf32, #tpu.memory_space<vmem>>) attributes {dimension_semantics = [#tpu.dimension_semantics<parallel>, #tpu.dimension_semantics<parallel>], iteration_bounds = array<i64: 1, 1>, scalar_prefetch = 0 : i64, scratch_operands = 0 : i64, tpu.core_type = #tpu.core_type<tc>, window_params = [{transform_indices = @transform_0, window_bounds = array<i64: 32, 16>}, {transform_indices = @transform_1, window_bounds = array<i64: 32, 16>}, {transform_indices = @transform_2, window_bounds = array<i64: 32, 16>}, {transform_indices = @transform_3, window_bounds = array<i64: 8, 16>}]} {
    %c0 = arith.constant 0 : index
    %c0_0 = arith.constant 0 : index
    %0 = vector.load %arg4[%c0, %c0_0] : memref<32x16xf32, #tpu.memory_space<vmem>>, vector<32x16xf32>
    %c0_1 = arith.constant 0 : index
    %c0_2 = arith.constant 0 : index
    %1 = vector.load %arg2[%c0_1, %c0_2] : memref<32x16xi32, #tpu.memory_space<vmem>>, vector<32x16xi32>
    %c0_3 = arith.constant 0 : index
    %c0_4 = arith.constant 0 : index
    %2 = vector.load %arg3[%c0_3, %c0_4] : memref<32x16xi8, #tpu.memory_space<vmem>>, vector<32x16xi8>
    %3 = tpu.iota {dimensions = array<i32: 0>} : vector<32x16xi32>
    %c0_i32 = arith.constant 0 : i32
    %4 = vector.broadcast %c0_i32 : i32 to vector<32x16xi32>
    %5 = arith.cmpi sgt, %1, %4 : vector<32x16xi32>
    %c32_i32 = arith.constant 32 : i32
    %6 = arith.muli %arg0, %c32_i32 : i32
    %c4_i32 = arith.constant 4 : i32
    %7 = arith.subi %c4_i32, %6 : i32
    %8 = vector.broadcast %7 : i32 to vector<32x16xi32>
    %9 = arith.cmpi slt, %3, %8 : vector<32x16xi32>
    %10 = arith.andi %5, %9 : vector<32x16xi1>
    %11 = tpu.iota {dimensions = array<i32: 1>} : vector<32x16xi32>
    %c16_i32 = arith.constant 16 : i32
    %12 = arith.muli %arg1, %c16_i32 : i32
    %c16_i32_5 = arith.constant 16 : i32
    %13 = arith.subi %c16_i32_5, %12 : i32
    %14 = vector.broadcast %13 : i32 to vector<32x16xi32>
    %15 = arith.cmpi slt, %11, %14 : vector<32x16xi32>
    %16 = arith.andi %10, %15 : vector<32x16xi1>
    %c0_i8 = arith.constant 0 : i8
    %17 = vector.broadcast %c0_i8 : i8 to vector<32x16xi8>
    %18 = arith.cmpi ne, %2, %17 : vector<32x16xi8>
    %cst = arith.constant 1.000000e+00 : f32
    %19 = vector.broadcast %cst : f32 to vector<32x16xf32>
    %20 = arith.subf %19, %0 : vector<32x16xf32>
    %21 = arith.select %18, %0, %20 : vector<32x16xi1>, vector<32x16xf32>
    %cst_6 = arith.constant 1.000000e+00 : f32
    %22 = vector.broadcast %cst_6 : f32 to vector<32x16xf32>
    %23 = arith.select %16, %21, %22 : vector<32x16xi1>, vector<32x16xf32>
    %24 = math.log %23 : vector<32x16xf32>
    %cst_7 = arith.constant -1.000000e+02 : f32
    %25 = vector.broadcast %cst_7 : f32 to vector<32x16xf32>
    %26 = arith.maximumf %24, %25 : vector<32x16xf32>
    %cst_8 = arith.constant dense<0.000000e+00> : vector<16xf32>
    %27 = vector.multi_reduction <add>, %26, %cst_8 [0] : vector<32x16xf32> to vector<16xf32>
    %28 = vector.shape_cast %27 : vector<16xf32> to vector<1x16xf32>
    %29 = arith.extui %16 : vector<32x16xi1> to vector<32x16xi32>
    %30 = arith.sitofp %29 : vector<32x16xi32> to vector<32x16xf32>
    %cst_9 = arith.constant dense<0.000000e+00> : vector<16xf32>
    %31 = vector.multi_reduction <add>, %30, %cst_9 [0] : vector<32x16xf32> to vector<16xf32>
    %32 = vector.shape_cast %31 : vector<16xf32> to vector<1x16xf32>
    %33 = tpu.iota {dimensions = array<i32: 0>} : vector<8x16xi32>
    %c0_i32_10 = arith.constant 0 : i32
    %34 = vector.broadcast %c0_i32_10 : i32 to vector<8x16xi32>
    %35 = arith.cmpi eq, %33, %34 : vector<8x16xi32>
    %c1_i32 = arith.constant 1 : i32
    %36 = vector.broadcast %c1_i32 : i32 to vector<8x16xi32>
    %37 = arith.cmpi eq, %33, %36 : vector<8x16xi32>
    %cst_11 = arith.constant 0.000000e+00 : f32
    %38 = vector.shape_cast %32 : vector<1x16xf32> to vector<1x16xf32>
    %39 = vector.broadcast %38 : vector<1x16xf32> to vector<8x16xf32>
    %40 = vector.broadcast %cst_11 : f32 to vector<8x16xf32>
    %41 = arith.select %37, %39, %40 : vector<8x16xi1>, vector<8x16xf32>
    %42 = vector.shape_cast %28 : vector<1x16xf32> to vector<1x16xf32>
    %43 = vector.broadcast %42 : vector<1x16xf32> to vector<8x16xf32>
    %44 = arith.select %35, %43, %41 : vector<8x16xi1>, vector<8x16xf32>
    %c0_12 = arith.constant 0 : index
    %c0_13 = arith.constant 0 : index
    %45 = vector.load %arg5[%c0_12, %c0_13] : memref<8x16xf32, #tpu.memory_space<vmem>>, vector<8x16xf32>
    tpu.vector_store %arg5[%c0_12, %c0_13], %44 {strides = array<i32>} : memref<8x16xf32, #tpu.memory_space<vmem>>, vector<8x16xf32>,
    return
  }
  func.func @transform_0(%arg0: i32, %arg1: i32) -> (i32, i32) {
    %c0_i32 = arith.constant 0 : i32
    %c0_i32_0 = arith.constant 0 : i32
    return %arg0, %c0_i32 : i32, i32
  }
  func.func @transform_1(%arg0: i32, %arg1: i32) -> (i32, i32) {
    %c0_i32 = arith.constant 0 : i32
    %c0_i32_0 = arith.constant 0 : i32
    return %arg0, %c0_i32 : i32, i32
  }
  func.func @transform_2(%arg0: i32, %arg1: i32) -> (i32, i32) {
    %c0_i32 = arith.constant 0 : i32
    %c0_i32_0 = arith.constant 0 : i32
    return %arg0, %c0_i32 : i32, i32
  }
  func.func @transform_3(%arg0: i32, %arg1: i32) -> (i32, i32) {
    %c0_i32 = arith.constant 0 : i32
    return %arg0, %arg1 : i32, i32
  }
}

</mosaic_0001>

<bundles_post_ra>
// kernel: tpu_custom_call.1
= control target key start
LH: loop header
LB: loop body
LE: loop exit
PB: predicated region body
PF: predicated region fallthrough
CT: control target
= control target key end

     0   :  { %8 = vsyncpa [#allocation3], 0  ;;  %s290_s0 = inlined_call_operand.vmem [shape: s32[4,17], index: 0, kind: input, shape index: {}]   ;;  %s291_s1 = inlined_call_operand.vmem [shape: s32[4,17], index: 1, kind: input, shape index: {}]   ;;  %s292_s2 = inlined_call_operand.hbm [shape: f32[4,16], index: 2, kind: input, shape index: {}]   ;;  %s293_s3 = inlined_call_operand.hbm [shape: f32[8,16], index: 3, kind: output, shape index: {}]  }
   0x1   :  { %9 = vsyncpa [#allocation4], 0 }
   0x2   :  { %17 = vsyncadd [#allocation3], 448  ;;  %s18_s14 = sshll.u32 %s292_s2, 4  ;;  %s250_s15 = smov [#allocation2]   ;;  %s19_s14 = int_to_ptr.hbm [resolvable:$true] %s18_s14 }
   0x3   :  { %s20_s16 = sshll.u32 %s250_s15, 4  ;;  %s251_s17 = smov 64   ;;  %s21_s16 = int_to_ptr.vmem [resolvable:$true] %s20_s16 }
   0x4   :  { %s252_s18 = smov 4  }
   0x5   :  { %26 = dma.hbm_to_vmem [thread:$0]  %s19_s14, 64, %s21_s16, [#allocation3], %s251_s17, %s251_s17, %s252_s18  }
   0x6   :  { %246 = dma.done.wait [#allocation3], 512  }
   0x7   :  { %247 = vsyncadd [#allocation3], 4294966784  ;;  %v31_v0 = vld [vmem:[#allocation2] sm:$0xff]  ;;  %s253_s19 = smov 1   ;;  %v47_v2 = vlaneseq  ;;  %v254_v7 = vmov 1.0   ;;  %v255_v8 = vmov 0.0  }
   0x8   :  { %75 = vrot.lane.b32.xlu0 %v31_v0, %s253_s19  ;;  %v67_v1 = vsub.f32 1.0, %v31_v0  ;;  %v35_v5 = vld [vmem:[%s290_s0] sm:$0xff]  ;;  %194 = vlog2.f32 %v254_v7  ;;  %vm123_vm4 = vcmask 138248   ;;  %s256_s0 = smov 127   ;;  %s175_s26 = sshll.u32 %s293_s3, 4  ;;  %vm166_vm7 = vcmask 130048   ;;  %s176_s26 = int_to_ptr.hbm [resolvable:$true] %s175_s26 }
   0x9   :  { %v48_v4 = vshrl.u32 %v47_v2, 7  ;;  %v39_v6 = vld [vmem:[%s291_s1] sm:$0xff]  ;;  %vm52_vm0 = vcmp.gt.s32.totalorder %v35_v5, 0  ;;  %s257_s1 = smov [#allocation5]  }
   0xa   :  { %vm43_vm2 = vcmp.ne.s32.totalorder %v39_v6, 0  ;;  %s173_s23 = sshll.u32 %s257_s1, 4  ;;  %s174_s23 = int_to_ptr.vmem [resolvable:$true] %s173_s23 }
   0xb   :  { %vm59_vm1 = vcmp.lt.s32.totalorder %v48_v4, 4  ;;  %vm159_vm5 = vcmp.eq.s32.totalorder %v48_v4, 1  ;;  %vm158_vm6 = vcmp.eq.s32.totalorder %v48_v4, 0 }
   0xc   :  { %vm63_vm3 = vmand %vm52_vm0, %vm59_vm1 }
   0xd   :  { %v185_v9 = vsel %vm63_vm3, 1.0, %v255_v8 }
   0xe   :  { %v195_v11 = vpop.eup %194  ;;  %v145_v14 = vsel %vm123_vm4, %v185_v9, 0.0 }
   0xf   :  { %v114_v15 = vmul.f32 0.6931472, %v195_v11  ;;  %v152_v16 = vrot.slane %v145_v14, 4 }
  0x10   :  { %91 = vrot.lane.b32.xlu0 %v67_v1, %s253_s19 }
  0x11   :  { %v120_v17 = vmax.f32 %v114_v15, -100.0  ;;  %v153_v19 = vadd.f32 %v152_v16, %v145_v14 }
  0x13   :  { %v125_v21 = vsel %vm123_vm4, %v120_v17, 0.0  ;;  %v154_v24 = vrot.slane %v153_v19, 2 }
  0x15   :  { %v155_v27 = vadd.f32 %v154_v24, %v153_v19 }
  0x17   :  { %v156_v30 = vrot.slane %v155_v27, 1 }
  0x19   :  { %v157_v33 = vadd.f32 %v156_v30, %v155_v27 }
  0x1b   :  { %v160_v36 = vsel %vm159_vm5, %v157_v33, 0.0 }
  0x7a   :  { %v76_v3 = vpop.permute.xlu0 %75 }
  0x82   :  { %v92_v10 = vpop.permute.xlu0 %91 }
  0x83   :  { %v103_v12 = vsel %vm43_vm2, %v76_v3, %v92_v10 }
  0x84   :  { %v107_v13 = vsel %vm63_vm3, %v103_v12, 1.0 }
  0x85   :  { %196 = vlog2.f32 %v107_v13 }
  0x8b   :  { %v197_v18 = vpop.eup %196 }
  0x8c   :  { %v112_v20 = vmul.f32 0.6931472, %v197_v18 }
  0x8e   :  { %v119_v22 = vmax.f32 %v112_v20, -100.0 }
  0x90   :  { %v124_v23 = vsel %vm123_vm4, %v119_v22, 0.0 }
  0x91   :  { %v126_v25 = vadd.f32 %v125_v21, %v124_v23 }
  0x93   :  { %v128_v26 = vadd.f32 %v126_v25, %v125_v21 }
  0x95   :  { %v130_v28 = vadd.f32 %v128_v26, %v125_v21 }
  0x97   :  { %v131_v29 = vrot.slane %v130_v28, 4 }
  0x99   :  { %v132_v31 = vadd.f32 %v131_v29, %v130_v28 }
  0x9b   :  { %v133_v32 = vrot.slane %v132_v31, 2 }
  0x9d   :  { %v134_v34 = vadd.f32 %v133_v32, %v132_v31 }
  0x9f   :  { %v135_v35 = vrot.slane %v134_v34, 1 }
  0xa1   :  { %v136_v37 = vadd.f32 %v135_v35, %v134_v34 }
  0xa3   :  { %v161_v38 = vsel %vm158_vm6, %v136_v37, %v160_v36 }
  0xa4   :  { %163 = vrot.lane.b32.xlu1 %v161_v38, %s256_s0 }
 0x116   :  { %v164_v39 = vpop.permute.xlu1 %163 }
 0x117   :  { %167 = vst.msk [vmem:[#allocation5] sm:$0xff] %vm166_vm7, %v164_v39 }
 0x118   :  { %178 = dma.vmem_to_hbm [thread:$0]  %s174_s23, 128, %s176_s26, [#allocation4]  }
 0x119   :  { %248 = dma.done.wait [#allocation4], 128  }
 0x11a   :  { %249 = vsyncadd [#allocation4], 4294967168 }
 0x11b   :  { %183 = vsyncpa [#allocation3], 1 }
 0x11c   :  { %184 = vsyncpa [#allocation4], 1 }

// kernel: tpu_custom_call.1
= control target key start
LH: loop header
LB: loop body
LE: loop exit
PB: predicated region body
PF: predicated region fallthrough
CT: control target
= control target key end

     0   :  { %8 = vsyncpa [#allocation3], 0  ;;  %s420_s0 = inlined_call_operand.hbm [shape: s32[4,16], index: 0, kind: input, shape index: {}]   ;;  %s421_s1 = inlined_call_operand.hbm [shape: s8[4,16], index: 1, kind: input, shape index: {}]   ;;  %s422_s2 = inlined_call_operand.hbm [shape: f32[4,16], index: 2, kind: input, shape index: {}]   ;;  %s423_s3 = inlined_call_operand.hbm [shape: f32[8,16], index: 3, kind: output, shape index: {}]  }
   0x1   :  { %9 = vsyncpa [#allocation6], 0 }
   0x2   :  { %10 = vsyncpa [#allocation4], 0 }
   0x3   :  { %14 = vsyncadd [#allocation3], 448  ;;  %s15_s14 = sshll.u32 %s420_s0, 4  ;;  %s373_s15 = smov [#allocation2]   ;;  %s16_s14 = int_to_ptr.hbm [resolvable:$true] %s15_s14 }
   0x4   :  { %s17_s16 = sshll.u32 %s373_s15, 4  ;;  %s374_s17 = smov 64   ;;  %s18_s16 = int_to_ptr.vmem [resolvable:$true] %s17_s16 }
   0x5   :  { %s375_s18 = smov 4  }
   0x6   :  { %23 = dma.hbm_to_vmem [thread:$0]  %s16_s14, 64, %s18_s16, [#allocation3], %s374_s17, %s374_s17, %s375_s18  }
   0x7   :  { %27 = vsyncadd [#allocation6], 112  ;;  %s28_s21 = sshll.u32 %s421_s1, 4  ;;  %s376_s22 = smov [#allocation5]   ;;  %s29_s21 = int_to_ptr.hbm [resolvable:$true] %s28_s21 }
   0x8   :  { %s30_s23 = sshll.u32 %s376_s22, 4  ;;  %s377_s24 = smov 16   ;;  %s31_s23 = int_to_ptr.vmem [resolvable:$true] %s30_s23 }
   0x9   :  { %s378_s25 = smov 1  }
   0xa   :  { %36 = dma.hbm_to_vmem [thread:$0]  %s29_s21, 16, %s31_s23, [#allocation6], %s377_s24, %s377_s24, %s378_s25  }
   0xb   :  { %40 = vsyncadd [#allocation6], 448  ;;  %s41_s27 = sshll.u32 %s422_s2, 4  ;;  %s379_s28 = smov [#allocation7]   ;;  %s42_s27 = int_to_ptr.hbm [resolvable:$true] %s41_s27 }
   0xc   :  { %s43_s29 = sshll.u32 %s379_s28, 4  ;;  %s44_s29 = int_to_ptr.vmem [resolvable:$true] %s43_s29 }
   0xd   :  { %49 = dma.hbm_to_vmem [thread:$0]  %s42_s27, 64, %s44_s29, [#allocation6], %s374_s17, %s374_s17, %s375_s18  }
   0xe   :  { %367 = dma.done.wait [#allocation3], 512  }
   0xf   :  { %368 = vsyncadd [#allocation3], 4294966784 }
  0x10   :  { %369 = dma.done.wait [#allocation6], 640  }
  0x11   :  { %370 = vsyncadd [#allocation6], 4294966656  ;;  %v72_v0 = vld [vmem:[#allocation5] sm:$0x1]  ;;  %v73_v1 = vld [vmem:[#allocation5 + $0x1] sm:$0x1]  ;;  %v80_v2 = vlaneseq }
  0x12   :  { %vm110_vm0 = vnez %v72_v0  ;;  %vm111_vm1 = vnez %v73_v1  ;;  %v380_v3 = vmov 0   ;;  %v68_v9 = vld [vmem:[#allocation2] sm:$0xff]  ;;  %v64_v13 = vld [vmem:[#allocation7] sm:$0xff]  ;;  %v381_v14 = vmov 1.0   ;;  %s383_s1 = smov [#allocation8]   ;;  %s244_s5 = sshll.u32 %s423_s3, 4  ;;  %s245_s5 = int_to_ptr.hbm [resolvable:$true] %s244_s5 }
  0x13   :  { %v122_v4 = vsel %vm110_vm0, 16843009, %v380_v3  ;;  %v123_v5 = vsel %vm111_vm1, 16843009, %v380_v3  ;;  %v81_v8 = vshrl.u32 %v80_v2, 7  ;;  %v101_v12 = vand.u32 127, %v80_v2 }
  0x14   :  { %v130_v6 = vunpack.c.0.s8 %v122_v4  ;;  %v131_v7 = vunpack.c.0.s8 %v123_v5  ;;  %vm85_vm4 = vcmp.gt.s32.totalorder %v68_v9, 0  ;;  %267 = vlog2.f32 %v381_v14  ;;  %s242_s2 = sshll.u32 %s383_s1, 4  ;;  %s243_s2 = int_to_ptr.vmem [resolvable:$true] %s242_s2 }
  0x15   :  { %vm92_vm5 = vcmp.lt.s32.totalorder %v81_v8, 4  ;;  %vm105_vm7 = vcmp.lt.s32.totalorder %v101_v12, 16  ;;  %v118_v15 = vsub.f32 1.0, %v64_v13  ;;  %v382_v17 = vmov 0.0  }
  0x16   :  { %vm138_vm2 = vcmp.ne.s32.totalorder %v130_v6, 0  ;;  %vm139_vm3 = vcmp.ne.s32.totalorder %v131_v7, 0  ;;  %vm96_vm6 = vmand %vm85_vm4, %vm92_vm5  ;;  %vm197_vm10 = vcmask 130048   ;;  %vm233_vm11 = vcmp.eq.s32.totalorder %v81_v8, 1 }
  0x17   :  { %v146_v10 = vsel %vm138_vm2, 1, %v380_v3  ;;  %v147_v11 = vsel %vm139_vm3, 1, %v380_v3  ;;  %vm106_vm8 = vmand %vm96_vm6, %vm105_vm7  ;;  %vm232_vm12 = vcmp.eq.s32.totalorder %v81_v8, 0 }
  0x18   :  { %154 = vst [vmem:[#allocation1] ss:$2 sm:$0xff] %v146_v10  ;;  %v255_v18 = vsel %vm106_vm8, 1.0, %v382_v17 }
  0x19   :  { %156 = vst [vmem:[#allocation1 + $0x1] ss:$2 sm:$0xff] %v147_v11  ;;  %v219_v22 = vsel %vm197_vm10, %v255_v18, 0.0 }
  0x1a   :  { %v268_v19 = vpop.eup %267  ;;  %v226_v24 = vrot.slane %v219_v22, 4 }
  0x1b   :  { %v188_v23 = vmul.f32 0.6931472, %v268_v19 }
  0x1c   :  { %v227_v28 = vadd.f32 %v226_v24, %v219_v22 }
  0x1d   :  { %v194_v25 = vmax.f32 %v188_v23, -100.0 }
  0x1e   :  { %v228_v32 = vrot.slane %v227_v28, 2 }
  0x1f   :  { %v199_v30 = vsel %vm197_vm10, %v194_v25, 0.0 }
  0x20   :  { %v169_v16 = vld.sshfl [vmem:[#allocation1] sm:$0xff pattern:$0x75316420]  ;;  %v229_v35 = vadd.f32 %v228_v32, %v227_v28 }
  0x21   :  { %vm173_vm9 = vcmp.ne.s32.totalorder %v169_v16, 0 }
  0x22   :  { %v177_v20 = vsel %vm173_vm9, %v64_v13, %v118_v15  ;;  %v230_v38 = vrot.slane %v229_v35, 1 }
  0x23   :  { %v181_v21 = vsel %vm106_vm8, %v177_v20, 1.0 }
  0x24   :  { %269 = vlog2.f32 %v181_v21  ;;  %v231_v41 = vadd.f32 %v230_v38, %v229_v35 }
  0x26   :  { %v234_v44 = vsel %vm233_vm11, %v231_v41, 0.0 }
  0x2a   :  { %v270_v26 = vpop.eup %269 }
  0x2b   :  { %v186_v27 = vmul.f32 0.6931472, %v270_v26 }
  0x2d   :  { %v193_v29 = vmax.f32 %v186_v27, -100.0 }
  0x2f   :  { %v198_v31 = vsel %vm197_vm10, %v193_v29, 0.0 }
  0x30   :  { %v200_v33 = vadd.f32 %v199_v30, %v198_v31 }
  0x32   :  { %v202_v34 = vadd.f32 %v200_v33, %v199_v30 }
  0x34   :  { %v204_v36 = vadd.f32 %v202_v34, %v199_v30 }
  0x36   :  { %v205_v37 = vrot.slane %v204_v36, 4 }
  0x38   :  { %v206_v39 = vadd.f32 %v205_v37, %v204_v36 }
  0x3a   :  { %v207_v40 = vrot.slane %v206_v39, 2 }
  0x3c   :  { %v208_v42 = vadd.f32 %v207_v40, %v206_v39 }
  0x3e   :  { %v209_v43 = vrot.slane %v208_v42, 1 }
  0x40   :  { %v210_v45 = vadd.f32 %v209_v43, %v208_v42 }
  0x42   :  { %v235_v46 = vsel %vm232_vm12, %v210_v45, %v234_v44 }
  0x43   :  { %236 = vst.msk [vmem:[#allocation8] sm:$0xff] %vm197_vm10, %v235_v46 }
  0x44   :  { %247 = dma.vmem_to_hbm [thread:$0]  %s243_s2, 128, %s245_s5, [#allocation4]  }
  0x45   :  { %371 = dma.done.wait [#allocation4], 128  }
  0x46   :  { %372 = vsyncadd [#allocation4], 4294967168 }
  0x47   :  { %252 = vsyncpa [#allocation3], 1 }
  0x48   :  { %253 = vsyncpa [#allocation6], 1 }
  0x49   :  { %254 = vsyncpa [#allocation4], 1 }

</bundles_post_ra>
